<compile_context>
chip_gen: v5e
topology: v5e:2x2
jax: 0.10.0
libtpu: 0.0.40
codegen_flags: <defaults>
</compile_context>

<pallas_src>
import functools

import jax
import jax.numpy as jnp
from jax.experimental import pallas as pl
from jax.experimental.pallas import tpu as pltpu


def _fused_chain_kernel(x_ref, pre_w_ref, pre_b_ref, ms_w_ref, ms_b_ref,
                        post_w_ref, post_b_ref, o_ref, h_ref):
    """Fused pre -> ms[...] -> post linear chain.

    x_ref:      [M, dim_in]
    pre_w_ref:  [dim_in, dim_h]   pre_b_ref:  [1, dim_h]
    ms_w_ref:   [L, dim_h, dim_h] ms_b_ref:   [L, 1, dim_h]
    post_w_ref: [dim_h, dim_out]  post_b_ref: [1, dim_out]
    o_ref:      [M, dim_out]
    h_ref:      [M, dim_h] f32 VMEM scratch (running activation)
    """
    # pre: x @ W_pre + b_pre  (f32 accumulator)
    h_ref[...] = (
        jnp.dot(x_ref[...], pre_w_ref[...], preferred_element_type=jnp.float32)
        + pre_b_ref[...].astype(jnp.float32)
    )

    # ms chain: static unroll over the (small) stacked layer axis.
    num_blocks = ms_w_ref.shape[0]
    for l in range(num_blocks):
        h_ref[...] = (
            jnp.dot(h_ref[...], ms_w_ref[l], preferred_element_type=jnp.float32)
            + ms_b_ref[l].astype(jnp.float32)
        )

    # post: only store that touches HBM.
    o_ref[...] = (
        jnp.dot(h_ref[...], post_w_ref[...], preferred_element_type=jnp.float32)
        + post_b_ref[...].astype(jnp.float32)
    ).astype(o_ref.dtype)


def model_pipe_forward(x, params):
    """x: [batch, seq, dim_in] -> [batch, seq, dim_out]

    params: dict with
      'pre'  : (W [dim_in, dim_h],  b [dim_h])
      'ms'   : list of (W [dim_h, dim_h], b [dim_h])
      'post' : (W [dim_h, dim_out], b [dim_out])
    """
    batch, seq, dim_in = x.shape
    M = batch * seq

    pre_w, pre_b = params["pre"]
    post_w, post_b = params["post"]
    dim_h = pre_w.shape[1]
    dim_out = post_w.shape[1]

    ms_w = jnp.stack([w for (w, _) in params["ms"]])               # [L, dim_h, dim_h]
    ms_b = jnp.stack([b for (_, b) in params["ms"]])[:, None, :]   # [L, 1, dim_h]

    x2d = x.reshape(M, dim_in)

    vmem_spec = pl.BlockSpec(memory_space=pltpu.MemorySpace.VMEM)
    out = pl.pallas_call(
        _fused_chain_kernel,
        out_shape=jax.ShapeDtypeStruct((M, dim_out), x.dtype),
        in_specs=[vmem_spec] * 7,
        out_specs=vmem_spec,
        scratch_shapes=[pltpu.VMEM((M, dim_h), jnp.float32)],
        compiler_params=pltpu.CompilerParams(vmem_limit_bytes=32 * 1024 * 1024),
    )(
        x2d,
        pre_w, pre_b.reshape(1, dim_h),
        ms_w, ms_b,
        post_w, post_b.reshape(1, dim_out),
    )
    return out.reshape(batch, seq, dim_out)


def make_params(key, dim_in, dim_h, dim_out, num_blocks, dtype=jnp.float32):
    """Deterministic parameter init (synthetic; no checkpoint load)."""
    keys = jax.random.split(key, 2 * (num_blocks + 2))
    ki = iter(range(len(keys)))

    def lin(kw, kb, fan_in, fan_out):
        scale = 1.0 / jnp.sqrt(jnp.asarray(fan_in, jnp.float32))
        w = (jax.random.normal(kw, (fan_in, fan_out), jnp.float32) * scale).astype(dtype)
        b = (jax.random.normal(kb, (fan_out,), jnp.float32) * 0.01).astype(dtype)
        return w, b

    pre = lin(keys[next(ki)], keys[next(ki)], dim_in, dim_h)
    ms = [lin(keys[next(ki)], keys[next(ki)], dim_h, dim_h) for _ in range(num_blocks)]
    post = lin(keys[next(ki)], keys[next(ki)], dim_h, dim_out)
    return {"pre": pre, "ms": ms, "post": post}


if __name__ == "__main__":
    key = jax.random.PRNGKey(0)
    k_x, k_p = jax.random.split(key)

    batch, seq, dim_in, dim_h, dim_out, num_blocks = 2, 8, 32, 64, 32, 3
    x = jax.random.normal(k_x, (batch, seq, dim_in), jnp.float32)
    params = make_params(k_p, dim_in, dim_h, dim_out, num_blocks)

    fwd = jax.jit(functools.partial(model_pipe_forward, params=params))
    out = fwd(x)
    jax.block_until_ready(out)

    # Pure-JAX reference check (chain of x @ W + b).
    ref = x.reshape(batch * seq, dim_in)
    for (w, b) in [params["pre"]] + params["ms"] + [params["post"]]:
        ref = ref @ w + b
    ref = ref.reshape(batch, seq, dim_out)
    assert jnp.allclose(out, ref, atol=1e-4, rtol=1e-4), "mismatch vs reference"

    print("KERNEL_OK")
</pallas_src>

<mosaic_0001>
module attributes {stable_mosaic.version = 11 : i64} {
  func.func @_fused_chain_kernel(%arg0: memref<16x32xf32, #tpu.memory_space<vmem>>, %arg1: memref<32x64xf32, #tpu.memory_space<vmem>>, %arg2: memref<1x64xf32, #tpu.memory_space<vmem>>, %arg3: memref<3x64x64xf32, #tpu.memory_space<vmem>>, %arg4: memref<3x1x64xf32, #tpu.memory_space<vmem>>, %arg5: memref<64x32xf32, #tpu.memory_space<vmem>>, %arg6: memref<1x32xf32, #tpu.memory_space<vmem>>, %arg7: memref<16x32xf32, #tpu.memory_space<vmem>>, %arg8: memref<16x64xf32, #tpu.memory_space<vmem>>) attributes {dimension_semantics = [], scalar_prefetch = 0 : i64, scratch_operands = 1 : i64, tpu.core_type = #tpu.core_type<tc>} {
    %c0 = arith.constant 0 : index
    %c0_0 = arith.constant 0 : index
    %0 = vector.load %arg0[%c0, %c0_0] : memref<16x32xf32, #tpu.memory_space<vmem>>, vector<16x32xf32>
    %c0_1 = arith.constant 0 : index
    %c0_2 = arith.constant 0 : index
    %1 = vector.load %arg1[%c0_1, %c0_2] : memref<32x64xf32, #tpu.memory_space<vmem>>, vector<32x64xf32>
    %cst = arith.constant dense<0.000000e+00> : vector<16x64xf32>
    %2 = tpu.matmul %0, %1, %cst {dimension_numbers = #tpu.dot_dimension_numbers<[1], [0], [0], [1], [0, 0, 1, 1], [], []>} : vector<16x32xf32>, vector<32x64xf32>, vector<16x64xf32> -> vector<16x64xf32>
    %c0_3 = arith.constant 0 : index
    %c0_4 = arith.constant 0 : index
    %3 = vector.load %arg2[%c0_3, %c0_4] : memref<1x64xf32, #tpu.memory_space<vmem>>, vector<1x64xf32>
    %4 = vector.broadcast %3 : vector<1x64xf32> to vector<16x64xf32>
    %5 = arith.addf %2, %4 : vector<16x64xf32>
    %c0_5 = arith.constant 0 : index
    %c0_6 = arith.constant 0 : index
    %6 = vector.load %arg8[%c0_5, %c0_6] : memref<16x64xf32, #tpu.memory_space<vmem>>, vector<16x64xf32>
    tpu.vector_store %arg8[%c0_5, %c0_6], %5 {strides = array<i32>} : memref<16x64xf32, #tpu.memory_space<vmem>>, vector<16x64xf32>,
    %c0_7 = arith.constant 0 : index
    %c0_8 = arith.constant 0 : index
    %7 = vector.load %arg8[%c0_7, %c0_8] : memref<16x64xf32, #tpu.memory_space<vmem>>, vector<16x64xf32>
    %c0_9 = arith.constant 0 : index
    %c0_10 = arith.constant 0 : index
    %c0_11 = arith.constant 0 : index
    %8 = vector.load %arg3[%c0_9, %c0_10, %c0_11] : memref<3x64x64xf32, #tpu.memory_space<vmem>>, vector<1x64x64xf32>
    %9 = vector.shape_cast %8 : vector<1x64x64xf32> to vector<64x64xf32>
    %cst_12 = arith.constant dense<0.000000e+00> : vector<16x64xf32>
    %10 = tpu.matmul %7, %9, %cst_12 {dimension_numbers = #tpu.dot_dimension_numbers<[1], [0], [0], [1], [0, 0, 1, 1], [], []>} : vector<16x64xf32>, vector<64x64xf32>, vector<16x64xf32> -> vector<16x64xf32>
    %c0_13 = arith.constant 0 : index
    %c0_14 = arith.constant 0 : index
    %c0_15 = arith.constant 0 : index
    %11 = vector.load %arg4[%c0_13, %c0_14, %c0_15] : memref<3x1x64xf32, #tpu.memory_space<vmem>>, vector<1x1x64xf32>
    %12 = vector.shape_cast %11 : vector<1x1x64xf32> to vector<1x64xf32>
    %13 = vector.broadcast %12 : vector<1x64xf32> to vector<16x64xf32>
    %14 = arith.addf %10, %13 : vector<16x64xf32>
    %c0_16 = arith.constant 0 : index
    %c0_17 = arith.constant 0 : index
    %15 = vector.load %arg8[%c0_16, %c0_17] : memref<16x64xf32, #tpu.memory_space<vmem>>, vector<16x64xf32>
    tpu.vector_store %arg8[%c0_16, %c0_17], %14 {strides = array<i32>} : memref<16x64xf32, #tpu.memory_space<vmem>>, vector<16x64xf32>,
    %c0_18 = arith.constant 0 : index
    %c0_19 = arith.constant 0 : index
    %16 = vector.load %arg8[%c0_18, %c0_19] : memref<16x64xf32, #tpu.memory_space<vmem>>, vector<16x64xf32>
    %c1 = arith.constant 1 : index
    %c0_20 = arith.constant 0 : index
    %c0_21 = arith.constant 0 : index
    %17 = vector.load %arg3[%c1, %c0_20, %c0_21] : memref<3x64x64xf32, #tpu.memory_space<vmem>>, vector<1x64x64xf32>
    %18 = vector.shape_cast %17 : vector<1x64x64xf32> to vector<64x64xf32>
    %cst_22 = arith.constant dense<0.000000e+00> : vector<16x64xf32>
    %19 = tpu.matmul %16, %18, %cst_22 {dimension_numbers = #tpu.dot_dimension_numbers<[1], [0], [0], [1], [0, 0, 1, 1], [], []>} : vector<16x64xf32>, vector<64x64xf32>, vector<16x64xf32> -> vector<16x64xf32>
    %c1_23 = arith.constant 1 : index
    %c0_24 = arith.constant 0 : index
    %c0_25 = arith.constant 0 : index
    %20 = vector.load %arg4[%c1_23, %c0_24, %c0_25] : memref<3x1x64xf32, #tpu.memory_space<vmem>>, vector<1x1x64xf32>
    %21 = vector.shape_cast %20 : vector<1x1x64xf32> to vector<1x64xf32>
    %22 = vector.broadcast %21 : vector<1x64xf32> to vector<16x64xf32>
    %23 = arith.addf %19, %22 : vector<16x64xf32>
    %c0_26 = arith.constant 0 : index
    %c0_27 = arith.constant 0 : index
    %24 = vector.load %arg8[%c0_26, %c0_27] : memref<16x64xf32, #tpu.memory_space<vmem>>, vector<16x64xf32>
    tpu.vector_store %arg8[%c0_26, %c0_27], %23 {strides = array<i32>} : memref<16x64xf32, #tpu.memory_space<vmem>>, vector<16x64xf32>,
    %c0_28 = arith.constant 0 : index
    %c0_29 = arith.constant 0 : index
    %25 = vector.load %arg8[%c0_28, %c0_29] : memref<16x64xf32, #tpu.memory_space<vmem>>, vector<16x64xf32>
    %c2 = arith.constant 2 : index
    %c0_30 = arith.constant 0 : index
    %c0_31 = arith.constant 0 : index
    %26 = vector.load %arg3[%c2, %c0_30, %c0_31] : memref<3x64x64xf32, #tpu.memory_space<vmem>>, vector<1x64x64xf32>
    %27 = vector.shape_cast %26 : vector<1x64x64xf32> to vector<64x64xf32>
    %cst_32 = arith.constant dense<0.000000e+00> : vector<16x64xf32>
    %28 = tpu.matmul %25, %27, %cst_32 {dimension_numbers = #tpu.dot_dimension_numbers<[1], [0], [0], [1], [0, 0, 1, 1], [], []>} : vector<16x64xf32>, vector<64x64xf32>, vector<16x64xf32> -> vector<16x64xf32>
    %c2_33 = arith.constant 2 : index
    %c0_34 = arith.constant 0 : index
    %c0_35 = arith.constant 0 : index
    %29 = vector.load %arg4[%c2_33, %c0_34, %c0_35] : memref<3x1x64xf32, #tpu.memory_space<vmem>>, vector<1x1x64xf32>
    %30 = vector.shape_cast %29 : vector<1x1x64xf32> to vector<1x64xf32>
    %31 = vector.broadcast %30 : vector<1x64xf32> to vector<16x64xf32>
    %32 = arith.addf %28, %31 : vector<16x64xf32>
    %c0_36 = arith.constant 0 : index
    %c0_37 = arith.constant 0 : index
    %33 = vector.load %arg8[%c0_36, %c0_37] : memref<16x64xf32, #tpu.memory_space<vmem>>, vector<16x64xf32>
    tpu.vector_store %arg8[%c0_36, %c0_37], %32 {strides = array<i32>} : memref<16x64xf32, #tpu.memory_space<vmem>>, vector<16x64xf32>,
    %c0_38 = arith.constant 0 : index
    %c0_39 = arith.constant 0 : index
    %34 = vector.load %arg8[%c0_38, %c0_39] : memref<16x64xf32, #tpu.memory_space<vmem>>, vector<16x64xf32>
    %c0_40 = arith.constant 0 : index
    %c0_41 = arith.constant 0 : index
    %35 = vector.load %arg5[%c0_40, %c0_41] : memref<64x32xf32, #tpu.memory_space<vmem>>, vector<64x32xf32>
    %cst_42 = arith.constant dense<0.000000e+00> : vector<16x32xf32>
    %36 = tpu.matmul %34, %35, %cst_42 {dimension_numbers = #tpu.dot_dimension_numbers<[1], [0], [0], [1], [0, 0, 1, 1], [], []>} : vector<16x64xf32>, vector<64x32xf32>, vector<16x32xf32> -> vector<16x32xf32>
    %c0_43 = arith.constant 0 : index
    %c0_44 = arith.constant 0 : index
    %37 = vector.load %arg6[%c0_43, %c0_44] : memref<1x32xf32, #tpu.memory_space<vmem>>, vector<1x32xf32>
    %38 = vector.broadcast %37 : vector<1x32xf32> to vector<16x32xf32>
    %39 = arith.addf %36, %38 : vector<16x32xf32>
    %c0_45 = arith.constant 0 : index
    %c0_46 = arith.constant 0 : index
    %40 = vector.load %arg7[%c0_45, %c0_46] : memref<16x32xf32, #tpu.memory_space<vmem>>, vector<16x32xf32>
    tpu.vector_store %arg7[%c0_45, %c0_46], %39 {strides = array<i32>} : memref<16x32xf32, #tpu.memory_space<vmem>>, vector<16x32xf32>,
    return
  }
}

</mosaic_0001>

<bundles_post_ra>
// kernel: model_pipe_forward.1
= control target key start
LH: loop header
LB: loop body
LE: loop exit
PB: predicated region body
PF: predicated region fallthrough
CT: control target
= control target key end

     0   :  { %12 = vsyncpa [#allocation4], 0  ;;  %s641_s0 = inlined_call_operand.hbm [shape: f32[16,32], index: 0, kind: input, shape index: {}]   ;;  %s642_s1 = inlined_call_operand.hbm [shape: f32[32,64], index: 1, kind: input, shape index: {}]   ;;  %s643_s2 = inlined_call_operand.vmem [shape: f32[1,64], index: 2, kind: input, shape index: {}]   ;;  %s644_s3 = inlined_call_operand.hbm [shape: f32[3,64,64], index: 3, kind: input, shape index: {}]   ;;  %s645_s4 = inlined_call_operand.vmem [shape: f32[3,1,64], index: 4, kind: input, shape index: {}]   ;;  %s646_s5 = inlined_call_operand.hbm [shape: f32[64,32], index: 5, kind: input, shape index: {}]   ;;  %s647_s6 = inlined_call_operand.hbm [shape: f32[1,32], index: 6, kind: input, shape index: {}]   ;;  %s648_s7 = inlined_call_operand.hbm [shape: f32[16,32], index: 7, kind: output, shape index: {}]  }
   0x1   :  { %13 = vsyncpa [#allocation7], 0 }
   0x2   :  { %14 = vsyncpa [#allocation10], 0 }
   0x3   :  { %15 = vsyncpa [#allocation5], 0  ;;  %s33_s26 = sshll.u32 %s642_s1, 4  ;;  %s528_s27 = smov [#allocation6]   ;;  %s34_s26 = int_to_ptr.hbm [resolvable:$true] %s33_s26 }
   0x4   :  { %s35_s28 = sshll.u32 %s528_s27, 4  ;;  %s63_s8 = sshll.u32 %s646_s5, 4  ;;  %s36_s28 = int_to_ptr.vmem [resolvable:$true] %s35_s28  ;;  %s64_s8 = int_to_ptr.hbm [resolvable:$true] %s63_s8 }
   0x5   :  { %s529_s9 = smov 128   ;;  %s530_s10 = smov 8  }
   0x6   :  { %41 = dma.hbm_to_vmem [thread:$0]  %s34_s26, 512, %s36_s28, [#allocation7], %s529_s9, %s529_s9, %s530_s10  }
   0x7   :  { %s531_s11 = smov [#allocation9]   ;;  %s20_s1 = sshll.u32 %s641_s0, 4  ;;  %s21_s1 = int_to_ptr.hbm [resolvable:$true] %s20_s1 }
   0x8   :  { %s65_s12 = sshll.u32 %s531_s11, 4  ;;  %s48_s16 = sshll.u32 %s644_s3, 4  ;;  %s66_s12 = int_to_ptr.vmem [resolvable:$true] %s65_s12  ;;  %s49_s16 = int_to_ptr.hbm [resolvable:$true] %s48_s16 }
   0x9   :  { %71 = dma.hbm_to_vmem [thread:$0]  %s64_s8, 1024, %s66_s12, [#allocation10], %s529_s9, %s529_s9, %s530_s10  }
   0xa   :  { %s532_s17 = smov [#allocation3]   ;;  %s533_s19 = smov [#allocation8]  }
   0xb   :  { %s22_s18 = sshll.u32 %s532_s17, 4  ;;  %s50_s0 = sshll.u32 %s533_s19, 4  ;;  %s23_s18 = int_to_ptr.vmem [resolvable:$true] %s22_s18  ;;  %s51_s0 = int_to_ptr.vmem [resolvable:$true] %s50_s0 }
   0xc   :  { %28 = dma.hbm_to_vmem [thread:$0]  %s21_s1, 256, %s23_s18, [#allocation4], %s529_s9, %s529_s9, %s530_s10  }
   0xd   :  { %s77_s22 = sshll.u32 %s647_s6, 4  ;;  %s534_s3 = smov [#allocation11]   ;;  %s78_s22 = int_to_ptr.hbm [resolvable:$true] %s77_s22 }
   0xe   :  { %56 = dma.hbm_to_vmem [thread:$0]  %s49_s16, 3072, %s51_s0, [#allocation7], %s529_s9, %s529_s9, %s530_s10  }
   0xf   :  { %s79_s23 = sshll.u32 %s534_s3, 4  ;;  %s80_s23 = int_to_ptr.vmem [resolvable:$true] %s79_s23 }
  0x10   :  { %82 = dma.hbm_to_vmem [thread:$0]  %s78_s22, 16, %s80_s23, [#allocation10]  }
  0x11   :  { %520 = dma.done.wait [#allocation4], 256  }
  0x12   :  { %521 = vsyncadd [#allocation4], 4294967040 }
  0x13   :  { %522 = dma.done.wait [#allocation7], 3584  }
  0x14   :  { %523 = vsyncadd [#allocation7], 4294963712 }
  0x15   :  { %524 = dma.done.wait [#allocation10], 1040  }
  0x16   :  { %525 = vsyncadd [#allocation10], 4294966256  ;;  %v108_v0 = vld [vmem:[#allocation6 + $0x18] sm:$0xff]  ;;  %v107_v1 = vld [vmem:[#allocation6 + $0x10] sm:$0xff]  ;;  %vm113_vm0 = vcmask 261120   ;;  %vm143_vm1 = vcmask 523264  }
  0x17   :  { %132 = vmatpush.msra.mxu0 %v108_v0  ;;  %v106_v2 = vld [vmem:[#allocation6 + $0x8] sm:$0xff]  ;;  %v155_v3 = vld [vmem:[#allocation8 + $0x38] sm:$0xff]  ;;  %v154_v4 = vld [vmem:[#allocation8 + $0x30] sm:$0xff]  ;;  %s336_s12 = sshll.u32 %s648_s7, 4  ;;  %s337_s12 = int_to_ptr.hbm [resolvable:$true] %s336_s12 }
  0x18   :  { %174 = vmatpush.msra.mxu1 %v155_v3  ;;  %v105_v5 = vld [vmem:[#allocation6] sm:$0xff]  ;;  %v103_v6 = vld [vmem:[#allocation3] sm:$0xff]  ;;  %v104_v7 = vld [vmem:[#allocation3 + $0x8] sm:$0xff] }
  0x19   :  { %133 = vmatpush.msra.mxu0 %v107_v1  ;;  %v153_v8 = vld [vmem:[#allocation8 + $0x28] sm:$0xff]  ;;  %v152_v9 = vld [vmem:[#allocation8 + $0x20] sm:$0xff]  ;;  %v151_v10 = vld [vmem:[#allocation8 + $0x18] sm:$0xff] }
  0x1a   :  { %175 = vmatpush.msra.mxu1 %v154_v4  ;;  %v150_v11 = vld [vmem:[#allocation8 + $0x10] sm:$0xff]  ;;  %v149_v12 = vld [vmem:[#allocation8 + $0x8] sm:$0xff]  ;;  %v148_v13 = vld [vmem:[#allocation8] sm:$0xff] }
  0x1b   :  { %134 = vmatpush.msra.mxu0 %v106_v2  ;;  %v201_v14 = vld [vmem:[#allocation8 + $0x78] sm:$0xff]  ;;  %v200_v15 = vld [vmem:[#allocation8 + $0x70] sm:$0xff]  ;;  %v371_v16 = vld [vmem:[%s643_s2] ss:$0 sm:$0xff] }
  0x1c   :  { %176 = vmatpush.msra.mxu1 %v153_v8  ;;  %221 = vmatpush.msra.mxu2 %v201_v14  ;;  %v199_v23 = vld [vmem:[#allocation8 + $0x68] sm:$0xff]  ;;  %v198_v24 = vld [vmem:[#allocation8 + $0x60] sm:$0xff]  ;;  %v197_v25 = vld [vmem:[#allocation8 + $0x58] sm:$0xff] }
  0x1d   :  { %135 = vmatpush.msra.mxu0 %v105_v5  ;;  %v196_v26 = vld [vmem:[#allocation8 + $0x50] sm:$0xff]  ;;  %v195_v27 = vld [vmem:[#allocation8 + $0x48] sm:$0xff]  ;;  %v194_v28 = vld [vmem:[#allocation8 + $0x40] sm:$0xff] }
  0x1e   :  { %351 = vmatmul.msk.f32.vlgmr.msra.gmra.mxu0 %vm113_vm0, %v103_v6  ;;  %177 = vmatpush.msra.mxu1 %v152_v9  ;;  %v248_v29 = vld [vmem:[#allocation8 + $0xb8] sm:$0xff]  ;;  %v247_v30 = vld [vmem:[#allocation8 + $0xb0] sm:$0xff]  ;;  %v372_v31 = vld [vmem:[%s645_s4] ss:$0 sm:$0xff] }
  0x1f   :  { %222 = vmatpush.msra.mxu2 %v200_v15  ;;  %268 = vmatpush.msra.mxu3 %v248_v29  ;;  %v246_v38 = vld [vmem:[#allocation8 + $0xa8] sm:$0xff]  ;;  %v245_v39 = vld [vmem:[#allocation8 + $0xa0] sm:$0xff]  ;;  %v244_v40 = vld [vmem:[#allocation8 + $0x98] sm:$0xff] }
  0x20   :  { %178 = vmatpush.msra.mxu1 %v151_v10  ;;  %v243_v41 = vld [vmem:[#allocation8 + $0x90] sm:$0xff]  ;;  %v242_v42 = vld [vmem:[#allocation8 + $0x88] sm:$0xff]  ;;  %v241_v43 = vld [vmem:[#allocation8 + $0x80] sm:$0xff] }
  0x21   :  { %223 = vmatpush.msra.mxu2 %v199_v23  ;;  %269 = vmatpush.msra.mxu3 %v247_v30  ;;  %v294_v44 = vld [vmem:[#allocation9 + $0x38] sm:$0xff]  ;;  %v293_v45 = vld [vmem:[#allocation9 + $0x30] sm:$0xff]  ;;  %v292_v46 = vld [vmem:[#allocation9 + $0x28] sm:$0xff] }
  0x22   :  { %179 = vmatpush.msra.mxu1 %v150_v11  ;;  %313 = vmatpush.msrb.mxu0 %v294_v44  ;;  %v373_v47 = vld [vmem:[%s645_s4 + $0x1] ss:$0 sm:$0xff]  ;;  %v290_v55 = vld [vmem:[#allocation9 + $0x18] sm:$0xff]  ;;  %v289_v56 = vld [vmem:[#allocation9 + $0x10] sm:$0xff] }
  0x23   :  { %224 = vmatpush.msra.mxu2 %v198_v24  ;;  %270 = vmatpush.msra.mxu3 %v246_v38  ;;  %v291_v54 = vld [vmem:[#allocation9 + $0x20] sm:$0xff]  ;;  %v288_v57 = vld [vmem:[#allocation9 + $0x8] sm:$0xff] }
  0x24   :  { %180 = vmatpush.msra.mxu1 %v149_v12  ;;  %314 = vmatpush.msrb.mxu0 %v293_v45  ;;  %v287_v58 = vld [vmem:[#allocation9] sm:$0xff] }
  0x25   :  { %225 = vmatpush.msra.mxu2 %v197_v25  ;;  %271 = vmatpush.msra.mxu3 %v245_v39  ;;  %v374_v59 = vld [vmem:[%s645_s4 + $0x2] ss:$0 sm:$0xff]  ;;  %v375_v2 = vld [vmem:[#allocation11] ss:$0 sm:$0xff]  ;;  %s535_s4 = smov [#allocation12]  }
  0x26   :  { %352 = vmatmul.msk.f32.gmra.mxu0 %vm113_vm0, %v104_v7  ;;  %181 = vmatpush.msra.mxu1 %v148_v13  ;;  %s334_s30 = sshll.u32 %s535_s4, 4  ;;  %s335_s30 = int_to_ptr.vmem [resolvable:$true] %s334_s30 }
  0x27   :  { %226 = vmatpush.msra.mxu2 %v196_v26  ;;  %272 = vmatpush.msra.mxu3 %v244_v40 }
  0x28   :  { %315 = vmatpush.msrb.mxu0 %v292_v46 }
  0x29   :  { %227 = vmatpush.msra.mxu2 %v195_v27  ;;  %273 = vmatpush.msra.mxu3 %v243_v41 }
  0x2a   :  { %316 = vmatpush.msrb.mxu0 %v291_v54 }
  0x2b   :  { %228 = vmatpush.msra.mxu2 %v194_v28  ;;  %274 = vmatpush.msra.mxu3 %v242_v42 }
  0x2c   :  { %317 = vmatpush.msrb.mxu0 %v290_v55 }
  0x2d   :  { %275 = vmatpush.msra.mxu3 %v241_v43 }
  0x2e   :  { %318 = vmatpush.msrb.mxu0 %v289_v56 }
  0x30   :  { %319 = vmatpush.msrb.mxu0 %v288_v57 }
  0x32   :  { %320 = vmatpush.msrb.mxu0 %v287_v58 }
  0x9b   :  { %v137_v17 = vpop.f32.mrf.mxu0 }
  0x9c   :  { %v138_v18 = vadd.f32 %v371_v16, %v137_v17 }
  0x9e   :  { %144 = vst.msk [vmem:[#allocation2] sm:$0xff] %vm143_vm1, %v138_v18 }
  0xa3   :  { %v140_v19 = vpop.f32.mrf.mxu0 }
  0xa4   :  { %v141_v20 = vadd.f32 %v371_v16, %v140_v19 }
  0xa5   :  { %v146_v21 = vld [vmem:[#allocation2] sm:$0xff] }
  0xa6   :  { %145 = vst.msk [vmem:[#allocation2 + $0x8] sm:$0xff] %vm143_vm1, %v141_v20  ;;  %353 = vmatmul.msk.f32.vlgmr.msra.gmra.mxu1 %vm143_vm1, %v146_v21 }
  0xad   :  { %v147_v22 = vld [vmem:[#allocation2 + $0x8] sm:$0xff] }
  0xae   :  { %354 = vmatmul.msk.f32.gmra.mxu1 %vm143_vm1, %v147_v22 }
 0x123   :  { %v183_v32 = vpop.f32.mrf.mxu1 }
 0x124   :  { %v184_v33 = vadd.f32 %v372_v31, %v183_v32 }
 0x126   :  { %189 = vst.msk [vmem:[#allocation2] sm:$0xff] %vm143_vm1, %v184_v33 }
 0x12b   :  { %v186_v34 = vpop.f32.mrf.mxu1 }
 0x12c   :  { %v187_v35 = vadd.f32 %v372_v31, %v186_v34 }
 0x12d   :  { %v191_v36 = vld [vmem:[#allocation2] sm:$0xff] }
 0x12e   :  { %190 = vst.msk [vmem:[#allocation2 + $0x8] sm:$0xff] %vm143_vm1, %v187_v35  ;;  %356 = vmatmul.msk.f32.vlgmr.msra.gmra.mxu2 %vm143_vm1, %v191_v36 }
 0x135   :  { %v192_v37 = vld [vmem:[#allocation2 + $0x8] sm:$0xff] }
 0x136   :  { %357 = vmatmul.msk.f32.gmra.mxu2 %vm143_vm1, %v192_v37 }
 0x1b1   :  { %v230_v48 = vpop.f32.mrf.mxu2 }
 0x1b2   :  { %v231_v49 = vadd.f32 %v373_v47, %v230_v48 }
 0x1b4   :  { %236 = vst.msk [vmem:[#allocation2] sm:$0xff] %vm143_vm1, %v231_v49 }
 0x1b9   :  { %v233_v50 = vpop.f32.mrf.mxu2 }
 0x1ba   :  { %v234_v51 = vadd.f32 %v373_v47, %v233_v50 }
 0x1bb   :  { %v238_v52 = vld [vmem:[#allocation2] sm:$0xff] }
 0x1bc   :  { %237 = vst.msk [vmem:[#allocation2 + $0x8] sm:$0xff] %vm143_vm1, %v234_v51  ;;  %359 = vmatmul.msk.f32.vlgmr.msra.gmra.mxu3 %vm143_vm1, %v238_v52 }
 0x1c3   :  { %v239_v53 = vld [vmem:[#allocation2 + $0x8] sm:$0xff] }
 0x1c4   :  { %360 = vmatmul.msk.f32.gmra.mxu3 %vm143_vm1, %v239_v53 }
 0x23f   :  { %v277_v60 = vpop.f32.mrf.mxu3 }
 0x240   :  { %v278_v61 = vadd.f32 %v374_v59, %v277_v60 }
 0x242   :  { %283 = vst.msk [vmem:[#allocation2] sm:$0xff] %vm143_vm1, %v278_v61 }
 0x247   :  { %v280_v62 = vpop.f32.mrf.mxu3 }
 0x248   :  { %v281_v63 = vadd.f32 %v374_v59, %v280_v62 }
 0x249   :  { %v285_v0 = vld [vmem:[#allocation2] sm:$0xff] }
 0x24a   :  { %284 = vst.msk [vmem:[#allocation2 + $0x8] sm:$0xff] %vm143_vm1, %v281_v63  ;;  %361 = vmatmul.msk.f32.vlgmr.msrb.gmra.mxu0 %vm143_vm1, %v285_v0 }
 0x251   :  { %v286_v1 = vld [vmem:[#allocation2 + $0x8] sm:$0xff] }
 0x252   :  { %362 = vmatmul.msk.f32.gmra.mxu0 %vm143_vm1, %v286_v1 }
 0x2c7   :  { %v322_v3 = vpop.f32.mrf.mxu0 }
 0x2c8   :  { %v323_v4 = vadd.f32 %v375_v2, %v322_v3 }
 0x2ca   :  { %328 = vst.msk [vmem:[#allocation12] sm:$0xff] %vm113_vm0, %v323_v4 }
 0x2cf   :  { %v325_v5 = vpop.f32.mrf.mxu0 }
 0x2d0   :  { %v326_v6 = vadd.f32 %v375_v2, %v325_v5 }
 0x2d2   :  { %329 = vst.msk [vmem:[#allocation12 + $0x8] sm:$0xff] %vm113_vm0, %v326_v6 }
 0x2d3   :  { %342 = dma.vmem_to_hbm [thread:$0]  %s335_s30, 256, %s337_s12, [#allocation5], %s529_s9, %s529_s9, %s530_s10  }
 0x2d4   :  { %526 = dma.done.wait [#allocation5], 256  }
 0x2d5   :  { %527 = vsyncadd [#allocation5], 4294967040 }
 0x2d6   :  { %347 = vsyncpa [#allocation4], 1 }
 0x2d7   :  { %348 = vsyncpa [#allocation7], 1 }
 0x2d8   :  { %349 = vsyncpa [#allocation10], 1 }
 0x2d9   :  { %350 = vsyncpa [#allocation5], 1 }

</bundles_post_ra>
